<compile_context>
chip_gen: v5e
topology: v5e:2x2
jax: 0.10.0
libtpu: 0.0.40
codegen_flags: <defaults>
</compile_context>

<pallas_src>
import jax
import jax.numpy as jnp
import numpy as np
from jax.experimental import pallas as pl
from jax.experimental.pallas import tpu as pltpu


def weights_kernel(feat_t_ref, w_row_ref, pid_row_ref, pid_col_ref, out_ref):
    # gamma(features): [1, D] @ [D, N] -> [1, N]   (row oriented, lane-dense)
    logit = jnp.exp(
        jnp.dot(w_row_ref[...], feat_t_ref[...],
                preferred_element_type=jnp.float32)
    )

    # same[i, j] = 1.0 iff phrase_id[i] == phrase_id[j]  (VPU broadcast compare)
    same = (pid_col_ref[...] == pid_row_ref[...]).astype(jnp.float32)   # [N, N]

    # logit_partition[j] = sum_i logit[i] * same[i, j]  ==  scatter_add + gather
    partition = jnp.dot(logit, same, preferred_element_type=jnp.float32)  # [1, N]

    out_ref[...] = (logit / partition).astype(out_ref.dtype)


def weights_forward(features, phrase_id, unique_phrase, gamma_weight):
    """features: [N, D] f32; phrase_id: [N] int; unique_phrase: [P] (only its
    shape is used by the PyTorch module, and the same-group formulation makes
    it unnecessary here); gamma_weight: [1, D] (nn.Linear [out, in] layout)."""
    del unique_phrase  # shape-only in the original module; not needed
    N, D = features.shape

    feat_t = features.T.astype(jnp.float32)                    # [D, N]
    w_row = gamma_weight.reshape(1, D).astype(jnp.float32)     # [1, D]
    pid = phrase_id.astype(jnp.int32)
    pid_row = pid.reshape(1, N)
    pid_col = pid.reshape(N, 1)

    vmem = pl.BlockSpec(memory_space=pltpu.MemorySpace.VMEM)
    out_row = pl.pallas_call(
        weights_kernel,
        out_shape=jax.ShapeDtypeStruct((1, N), jnp.float32),
        in_specs=[vmem, vmem, vmem, vmem],
        out_specs=vmem,
    )(feat_t, w_row, pid_row, pid_col)

    return out_row.reshape(N, 1)


def weights_reference(features, phrase_id, unique_phrase, gamma_weight):
    """Pure-JAX reference reproducing the PyTorch forward (scatter_add version)."""
    logit = jnp.exp(features @ gamma_weight.reshape(-1, 1)).reshape(-1)   # [N]
    box = jnp.zeros(unique_phrase.shape, jnp.float32)
    logit_partition = box.at[phrase_id].add(logit)[phrase_id]
    return (logit / logit_partition)[:, None]


if __name__ == "__main__":
    # Full-f32 matmuls for both kernel and reference so they agree tightly.
    jax.config.update("jax_default_matmul_precision", "highest")

    N, D, P = 128, 32, 8    # region-phrase pairs, in_features, unique phrases

    key = jax.random.PRNGKey(0)
    k_feat, k_pid, k_w = jax.random.split(key, 3)

    features = jax.random.normal(k_feat, (N, D), dtype=jnp.float32)
    phrase_id = jax.random.randint(k_pid, (N,), 0, P, dtype=jnp.int32)
    unique_phrase = jnp.arange(P, dtype=jnp.int32)
    # nn.Linear(D, 1, bias=False) weight is [1, D]; small init keeps exp() tame.
    gamma_weight = (jax.random.normal(k_w, (1, D), dtype=jnp.float32)
                    * np.float32(np.sqrt(1.0 / D)))

    out = weights_forward(features, phrase_id, unique_phrase, gamma_weight)
    jax.block_until_ready(out)

    ref = weights_reference(features, phrase_id, unique_phrase, gamma_weight)
    np.testing.assert_allclose(np.asarray(out), np.asarray(ref),
                               rtol=1e-4, atol=1e-5)

    print("KERNEL_OK")
</pallas_src>

<mosaic_0001>
module attributes {stable_mosaic.version = 11 : i64} {
  func.func @weights_kernel(%arg0: memref<32x128xf32, #tpu.memory_space<vmem>>, %arg1: memref<1x32xf32, #tpu.memory_space<vmem>>, %arg2: memref<1x128xi32, #tpu.memory_space<vmem>>, %arg3: memref<128x1xi32, #tpu.memory_space<vmem>>, %arg4: memref<1x128xf32, #tpu.memory_space<vmem>>) attributes {dimension_semantics = [], scalar_prefetch = 0 : i64, scratch_operands = 0 : i64, tpu.core_type = #tpu.core_type<tc>} {
    %c0 = arith.constant 0 : index
    %c0_0 = arith.constant 0 : index
    %0 = vector.load %arg1[%c0, %c0_0] : memref<1x32xf32, #tpu.memory_space<vmem>>, vector<1x32xf32>
    %c0_1 = arith.constant 0 : index
    %c0_2 = arith.constant 0 : index
    %1 = vector.load %arg0[%c0_1, %c0_2] : memref<32x128xf32, #tpu.memory_space<vmem>>, vector<32x128xf32>
    %cst = arith.constant dense<0.000000e+00> : vector<1x128xf32>
    %2 = tpu.matmul %0, %1, %cst {dimension_numbers = #tpu.dot_dimension_numbers<[1], [0], [0], [1], [0, 0, 1, 1], [], []>, precision = #tpu.contract_precision<fp32>} : vector<1x32xf32>, vector<32x128xf32>, vector<1x128xf32> -> vector<1x128xf32>
    %3 = math.exp %2 : vector<1x128xf32>
    %c0_3 = arith.constant 0 : index
    %c0_4 = arith.constant 0 : index
    %4 = vector.load %arg3[%c0_3, %c0_4] : memref<128x1xi32, #tpu.memory_space<vmem>>, vector<128x1xi32>
    %c0_5 = arith.constant 0 : index
    %c0_6 = arith.constant 0 : index
    %5 = vector.load %arg2[%c0_5, %c0_6] : memref<1x128xi32, #tpu.memory_space<vmem>>, vector<1x128xi32>
    %6 = vector.broadcast %4 : vector<128x1xi32> to vector<128x128xi32>
    %7 = vector.broadcast %5 : vector<1x128xi32> to vector<128x128xi32>
    %8 = arith.cmpi eq, %6, %7 : vector<128x128xi32>
    %9 = arith.extui %8 : vector<128x128xi1> to vector<128x128xi32>
    %10 = arith.sitofp %9 : vector<128x128xi32> to vector<128x128xf32>
    %cst_7 = arith.constant dense<0.000000e+00> : vector<1x128xf32>
    %11 = tpu.matmul %3, %10, %cst_7 {dimension_numbers = #tpu.dot_dimension_numbers<[1], [0], [0], [1], [0, 0, 1, 1], [], []>, precision = #tpu.contract_precision<fp32>} : vector<1x128xf32>, vector<128x128xf32>, vector<1x128xf32> -> vector<1x128xf32>
    %12 = arith.divf %3, %11 : vector<1x128xf32>
    %c0_8 = arith.constant 0 : index
    %c0_9 = arith.constant 0 : index
    %13 = vector.load %arg4[%c0_8, %c0_9] : memref<1x128xf32, #tpu.memory_space<vmem>>, vector<1x128xf32>
    tpu.vector_store %arg4[%c0_8, %c0_9], %12 {strides = array<i32>} : memref<1x128xf32, #tpu.memory_space<vmem>>, vector<1x128xf32>,
    return
  }
}

</mosaic_0001>

<bundles_post_ra>
// kernel: tpu_custom_call.1
= control target key start
LH: loop header
LB: loop body
LE: loop exit
PB: predicated region body
PF: predicated region fallthrough
CT: control target
= control target key end

     0   :  { %v803_v3 = vmov 0   ;;  %vm23_vm0 = vcmask 261120   ;;  %s1393_s0 = inlined_call_operand.vmem [shape: f32[32,128], index: 0, kind: input, shape index: {}]   ;;  %s1394_s1 = inlined_call_operand.vmem [shape: f32[1,32], index: 1, kind: input, shape index: {}]   ;;  %s1395_s2 = inlined_call_operand.vmem [shape: s32[1,128], index: 2, kind: input, shape index: {}]   ;;  %s1396_s3 = inlined_call_operand.vmem [shape: s32[128,1], index: 3, kind: input, shape index: {}]   ;;  %s1397_s4 = inlined_call_operand.hbm [shape: f32[1,128], index: 4, kind: output, shape index: {}]  }
   0x1   :  { %v229_v0 = vld [vmem:[%s1396_s3 + $0x78] sm:$0xff]  ;;  %v227_v1 = vld [vmem:[%s1396_s3 + $0x68] sm:$0xff]  ;;  %771 = vset.pattern.permute.xlu2 %v803_v3  ;;  %770 = vset.pattern.permute.xlu1 %v803_v3  ;;  %v21_v5 = vld [vmem:[%s1393_s0 + $0x10] sm:$0xff] }
   0x2   :  { %v225_v2 = vld [vmem:[%s1396_s3 + $0x58] sm:$0xff]  ;;  %769 = vset.pattern.permute.xlu0 %v803_v3  ;;  %271 = vperm.xlu1 %770, %v227_v1   ;;  %v849_v7 = vand.u32 4294901760, %v21_v5  ;;  %v20_v8 = vld [vmem:[%s1393_s0 + $0x8] sm:$0xff]  ;;  %v19_v10 = vld [vmem:[%s1393_s0] sm:$0xff] }
   0x3   :  { %v22_v4 = vld [vmem:[%s1393_s0 + $0x18] sm:$0xff]  ;;  %277 = vperm.xlu0 %769, %v229_v0   ;;  %265 = vperm.xlu2 %771, %v225_v2   ;;  %v854_v9 = vand.u32 4294901760, %v20_v8  ;;  %v18_v11 = vld [vmem:[%s1394_s1] sm:$0x1]  ;;  %v864_v13 = vand.u32 4294901760, %v19_v10 }
   0x4   :  { %v847_v6 = vand.u32 4294901760, %v22_v4  ;;  %v75_v14 = vsub.f32 %v21_v5, %v849_v7  ;;  %v25_v15 = vsel %vm23_vm0, %v18_v11, 0  ;;  %v226_v21 = vld [vmem:[%s1396_s3 + $0x60] sm:$0xff] }
   0x5   :  { %v867_v16 = vand.u32 4294901760, %v25_v15  ;;  %v81_v17 = vsub.f32 %v20_v8, %v854_v9  ;;  %v87_v20 = vsub.f32 %v19_v10, %v864_v13 }
   0x6   :  { %40 = vmatpush.msra.mxu0 %v847_v6  ;;  %v69_v12 = vsub.f32 %v22_v4, %v847_v6  ;;  %v76_v19 = vand.u32 4294901760, %v75_v14 }
   0x7   :  { %v48_v22 = vsub.f32 %v25_v15, %v867_v16  ;;  %v82_v23 = vand.u32 4294901760, %v81_v17 }
   0x8   :  { %42 = vmatpush.msra.mxu0 %v849_v7  ;;  %v70_v18 = vand.u32 4294901760, %v69_v12 }
   0x9   :  { %9 = vsyncpa [#allocation3], 0  ;;  %v228_v24 = vld [vmem:[%s1396_s3 + $0x70] sm:$0xff]  ;;  %v77_v27 = vsub.f32 %v75_v14, %v76_v19  ;;  %v88_v28 = vand.u32 4294901760, %v87_v20  ;;  %v49_v29 = vand.u32 4294901760, %v48_v22  ;;  %v83_v30 = vsub.f32 %v81_v17, %v82_v23  ;;  %v222_v38 = vld [vmem:[%s1396_s3 + $0x40] sm:$0xff] }
   0xa   :  { %v224_v25 = vld [vmem:[%s1396_s3 + $0x50] sm:$0xff]  ;;  %44 = vmatpush.msra.mxu0 %v854_v9  ;;  %v71_v26 = vsub.f32 %v69_v12, %v70_v18  ;;  %268 = vperm.xlu1 %770, %v226_v21   ;;  %v223_v39 = vld [vmem:[%s1396_s3 + $0x48] sm:$0xff]  ;;  %v221_v40 = vld [vmem:[%s1396_s3 + $0x38] sm:$0xff]  ;;  %v804_v53 = vmov 0.0   ;;  %v805_v55 = vmov 1.0   ;;  %s692_s5 = sshll.u32 %s1397_s4, 4  ;;  %s693_s5 = int_to_ptr.hbm [resolvable:$true] %s692_s5 }
   0xb   :  { %v78_v32 = vand.u32 4294901760, %v77_v27  ;;  %v89_v33 = vsub.f32 %v87_v20, %v88_v28  ;;  %274 = vperm.xlu0 %769, %v228_v24   ;;  %262 = vperm.xlu2 %771, %v224_v25   ;;  %v50_v34 = vsub.f32 %v48_v22, %v49_v29  ;;  %v84_v35 = vand.u32 4294901760, %v83_v30  ;;  %v219_v41 = vld [vmem:[%s1396_s3 + $0x28] sm:$0xff]  ;;  %v220_v42 = vld [vmem:[%s1396_s3 + $0x30] sm:$0xff]  ;;  %v218_v43 = vld [vmem:[%s1396_s3 + $0x20] sm:$0xff] }
   0xc   :  { %v72_v31 = vand.u32 4294901760, %v71_v26  ;;  %46 = vmatpush.msra.mxu0 %v864_v13  ;;  %v216_v44 = vld [vmem:[%s1396_s3 + $0x10] sm:$0xff]  ;;  %v217_v45 = vld [vmem:[%s1396_s3 + $0x18] sm:$0xff]  ;;  %v215_v46 = vld [vmem:[%s1396_s3 + $0x8] sm:$0xff] }
   0xd   :  { %v51_v36 = vand.u32 4294901760, %v50_v34  ;;  %v90_v37 = vand.u32 4294901760, %v89_v33  ;;  %v214_v47 = vld [vmem:[%s1396_s3] sm:$0xff] }
   0xe   :  { %73 = vmatpush.msra.mxu1 %v72_v31  ;;  %111 = vmatpush.msrb.mxu0 %v69_v12  ;;  %v932_v50 = vld [vmem:[%s1395_s2] ss:$0 sm:$0xff]  ;;  %s806_s2 = smov [#allocation2]  }
   0xf   :  { %52 = vmatmul.f32.vlgmr.msra.gmra.mxu0 %v51_v36  ;;  %s690_s3 = sshll.u32 %s806_s2, 4  ;;  %s691_s3 = int_to_ptr.vmem [resolvable:$true] %s690_s3 }
  0x10   :  { %79 = vmatpush.msra.mxu1 %v78_v32  ;;  %114 = vmatpush.msrb.mxu0 %v75_v14 }
  0x12   :  { %85 = vmatpush.msra.mxu1 %v84_v35  ;;  %117 = vmatpush.msrb.mxu0 %v81_v17 }
  0x13   :  { %256 = vperm.xlu1 %770, %v222_v38   ;;  %259 = vperm.xlu0 %769, %v223_v39  }
  0x14   :  { %91 = vmatpush.msra.mxu1 %v90_v37  ;;  %253 = vperm.xlu2 %771, %v221_v40  }
  0x15   :  { %93 = vmatmul.f32.vlgmr.msra.gmra.mxu1 %v867_v16  ;;  %120 = vmatpush.msrb.mxu0 %v87_v20 }
  0x16   :  { %140 = vmatpush.msrb.mxu1 %v847_v6 }
  0x17   :  { %169 = vmatpush.msra.mxu0 %v70_v18 }
  0x18   :  { %142 = vmatpush.msrb.mxu1 %v849_v7  ;;  %123 = vmatmul.f32.vlgmr.msrb.gmra.mxu0 %v48_v22 }
  0x19   :  { %173 = vmatpush.msra.mxu0 %v76_v19 }
  0x1a   :  { %144 = vmatpush.msrb.mxu1 %v854_v9 }
  0x1b   :  { %247 = vperm.xlu1 %770, %v219_v41   ;;  %177 = vmatpush.msra.mxu0 %v82_v23 }
  0x1c   :  { %146 = vmatpush.msrb.mxu1 %v864_v13  ;;  %250 = vperm.xlu0 %769, %v220_v42  }
  0x1d   :  { %244 = vperm.xlu2 %771, %v218_v43   ;;  %150 = vmatmul.f32.vlgmr.msrb.gmra.mxu1 %v49_v29 }
  0x1e   :  { %200 = vmatpush.msra.mxu1 %v847_v6  ;;  %181 = vmatpush.msra.mxu0 %v88_v28 }
  0x20   :  { %202 = vmatpush.msra.mxu1 %v849_v7  ;;  %183 = vmatmul.f32.vlgmr.msra.gmra.mxu0 %v867_v16 }
  0x22   :  { %204 = vmatpush.msra.mxu1 %v854_v9 }
  0x23   :  { %238 = vperm.xlu1 %770, %v216_v44  }
  0x24   :  { %206 = vmatpush.msra.mxu1 %v864_v13  ;;  %241 = vperm.xlu0 %769, %v217_v45  }
  0x25   :  { %235 = vperm.xlu2 %771, %v215_v46   ;;  %208 = vmatmul.f32.vlgmr.msra.gmra.mxu1 %v867_v16 }
  0x2c   :  { %232 = vperm.xlu0 %769, %v214_v47  }
  0x5d   :  { %v925_v48 = vpop.permute.xlu2 %265 }
  0x5e   :  { %vm291_vm3 = vcmp.eq.s32.totalorder %v925_v48, %v932_v50 }
  0x5f   :  { %v712_v0 = vsel %vm291_vm3, 1.0, %v804_v53 }
  0x60   :  { %v1009_v7 = vsub.f32 %v712_v0, %v712_v0 }
  0x62   :  { %v395_v16 = vand.u32 4294901760, %v1009_v7 }
  0x64   :  { %v396_v27 = vsub.f32 %v1009_v7, %v395_v16 }
  0x65   :  { %v927_v49 = vpop.permute.xlu2 %262 }
  0x66   :  { %vm290_vm4 = vcmp.eq.s32.totalorder %v927_v49, %v932_v50  ;;  %v397_v36 = vand.u32 4294901760, %v396_v27 }
  0x67   :  { %v711_v3 = vsel %vm290_vm4, 1.0, %v804_v53 }
  0x68   :  { %v1020_v9 = vsub.f32 %v711_v3, %v711_v3 }
  0x6a   :  { %v401_v18 = vand.u32 4294901760, %v1020_v9 }
  0x6c   :  { %v402_v29 = vsub.f32 %v1020_v9, %v401_v18 }
  0x6e   :  { %v956_v57 = vpop.permute.xlu2 %253  ;;  %v403_v42 = vand.u32 4294901760, %v402_v29 }
  0x6f   :  { %vm287_vm7 = vcmp.eq.s32.totalorder %v956_v57, %v932_v50 }
  0x70   :  { %v708_v19 = vsel %vm287_vm7, 1.0, %v804_v53 }
  0x71   :  { %v1096_v28 = vsub.f32 %v708_v19, %v708_v19 }
  0x73   :  { %v419_v38 = vand.u32 4294901760, %v1096_v28 }
  0x74   :  { %v934_v51 = vpop.permute.xlu1 %271 }
  0x75   :  { %v936_v52 = vpop.permute.xlu0 %277  ;;  %vm293_vm2 = vcmp.eq.s32.totalorder %v934_v51, %v932_v50 }
  0x76   :  { %vm295_vm1 = vcmp.eq.s32.totalorder %v936_v52, %v932_v50  ;;  %v714_v58 = vsel %vm293_vm2, 1.0, %v804_v53 }
  0x77   :  { %v716_v54 = vsel %vm295_vm1, 1.0, %v804_v53  ;;  %717 = vmatpush.msk.msra.mxu2 %vm295_vm1, %v805_v55  ;;  %733 = vmatpush.msk.msrb.mxu1 %vm295_vm1, %v805_v55  ;;  %v973_v62 = vsub.f32 %v714_v58, %v714_v58  ;;  %v1027_v12 = vpop.permute.xlu2 %244  ;;  %v420_v58 = vsub.f32 %v1096_v28, %v419_v38 }
  0x78   :  { %v954_v56 = vsub.f32 %v716_v54, %v716_v54  ;;  %vm284_vm10 = vcmp.eq.s32.totalorder %v1027_v12, %v932_v50 }
  0x79   :  { %v383_v8 = vand.u32 4294901760, %v973_v62  ;;  %v705_v33 = vsel %vm284_vm10, 1.0, %v804_v53 }
  0x7a   :  { %472 = vmatpush.msrb.mxu0 %v954_v56  ;;  %v371_v59 = vand.u32 4294901760, %v954_v56  ;;  %v1145_v41 = vsub.f32 %v705_v33, %v705_v33 }
  0x7b   :  { %v384_v15 = vsub.f32 %v973_v62, %v383_v8 }
  0x7c   :  { %v968_v60 = vpop.permute.xlu1 %268  ;;  %v372_v61 = vsub.f32 %v954_v56, %v371_v59 }
  0x7d   :  { %v975_v63 = vpop.permute.xlu0 %274  ;;  %vm292_vm5 = vcmp.eq.s32.totalorder %v968_v60, %v932_v50  ;;  %v385_v25 = vand.u32 4294901760, %v384_v15 }
  0x7e   :  { %vm294_vm6 = vcmp.eq.s32.totalorder %v975_v63, %v932_v50  ;;  %v373_v1 = vand.u32 4294901760, %v372_v61  ;;  %v713_v2 = vsel %vm292_vm5, 1.0, %v804_v53 }
  0x7f   :  { %718 = vmatpush.msk.msra.mxu2 %vm294_vm6, %v805_v55  ;;  %734 = vmatpush.msk.msrb.mxu1 %vm294_vm6, %v805_v55  ;;  %v715_v4 = vsel %vm294_vm6, 1.0, %v804_v53  ;;  %v1005_v5 = vsub.f32 %v713_v2, %v713_v2  ;;  %v1131_v39 = vpop.permute.xlu2 %235 }
  0x80   :  { %374 = vmatpush.msra.mxu3 %v373_v1  ;;  %v1007_v6 = vsub.f32 %v715_v4, %v715_v4  ;;  %vm281_vm13 = vcmp.eq.s32.totalorder %v1131_v39, %v932_v50  ;;  %v437_v1 = vand.u32 4294901760, %v1145_v41 }
  0x81   :  { %719 = vmatpush.msk.msra.mxu2 %vm293_vm2, %v805_v55  ;;  %735 = vmatpush.msk.msrb.mxu1 %vm293_vm2, %v805_v55  ;;  %v389_v11 = vand.u32 4294901760, %v1005_v5  ;;  %v702_v4 = vsel %vm281_vm13, 1.0, %v804_v53 }
  0x82   :  { %475 = vmatpush.msrb.mxu0 %v1007_v6  ;;  %v377_v10 = vand.u32 4294901760, %v1007_v6 }
  0x83   :  { %720 = vmatpush.msk.msra.mxu2 %vm292_vm5, %v805_v55  ;;  %736 = vmatpush.msk.msrb.mxu1 %vm292_vm5, %v805_v55  ;;  %v390_v21 = vsub.f32 %v1005_v5, %v389_v11 }
  0x84   :  { %478 = vmatpush.msrb.mxu0 %v973_v62  ;;  %v378_v14 = vsub.f32 %v1007_v6, %v377_v10 }
  0x85   :  { %v1038_v13 = vpop.permute.xlu1 %256  ;;  %721 = vmatpush.msk.msra.mxu2 %vm291_vm3, %v805_v55  ;;  %v1051_v17 = vpop.permute.xlu0 %259  ;;  %737 = vmatpush.msk.msrb.mxu1 %vm291_vm3, %v805_v55  ;;  %v391_v30 = vand.u32 4294901760, %v390_v21 }
  0x86   :  { %vm288_vm8 = vcmp.eq.s32.totalorder %v1038_v13, %v932_v50  ;;  %vm289_vm9 = vcmp.eq.s32.totalorder %v1051_v17, %v932_v50  ;;  %481 = vmatpush.msrb.mxu0 %v1005_v5  ;;  %v379_v20 = vand.u32 4294901760, %v378_v14 }
  0x87   :  { %v709_v22 = vsel %vm288_vm8, 1.0, %v804_v53  ;;  %722 = vmatpush.msk.msra.mxu2 %vm290_vm4, %v805_v55  ;;  %738 = vmatpush.msk.msrb.mxu1 %vm290_vm4, %v805_v55  ;;  %v710_v23 = vsel %vm289_vm9, 1.0, %v804_v53 }
  0x88   :  { %v1088_v24 = vsub.f32 %v709_v22, %v709_v22  ;;  %380 = vmatpush.msra.mxu3 %v379_v20  ;;  %484 = vmatpush.msrb.mxu0 %v1009_v7  ;;  %v1091_v26 = vsub.f32 %v710_v23, %v710_v23  ;;  %v421_v20 = vand.u32 4294901760, %v420_v58 }
  0x89   :  { %723 = vmatpush.msk.msra.mxu2 %vm289_vm9, %v805_v55  ;;  %739 = vmatpush.msk.msrb.mxu1 %vm289_vm9, %v805_v55 }
  0x8a   :  { %386 = vmatpush.msra.mxu3 %v385_v25  ;;  %487 = vmatpush.msrb.mxu0 %v1020_v9  ;;  %v407_v31 = vand.u32 4294901760, %v1091_v26  ;;  %v413_v32 = vand.u32 4294901760, %v1088_v24  ;;  %v438_v25 = vsub.f32 %v1145_v41, %v437_v1 }
  0x8b   :  { %724 = vmatpush.msk.msra.mxu2 %vm288_vm8, %v805_v55  ;;  %740 = vmatpush.msk.msrb.mxu1 %vm288_vm8, %v805_v55 }
  0x8c   :  { %v53_v34 = vpop.f32.mrf.mxu0  ;;  %392 = vmatpush.msra.mxu3 %v391_v30  ;;  %490 = vmatpush.msrb.mxu0 %v1091_v26  ;;  %v408_v37 = vsub.f32 %v1091_v26, %v407_v31  ;;  %v414_v43 = vsub.f32 %v1088_v24, %v413_v32  ;;  %v1226_v30 = vsub.f32 %v702_v4, %v702_v4 }
  0x8d   :  { %v1125_v35 = vpop.permute.xlu1 %247  ;;  %725 = vmatpush.msk.msra.mxu2 %vm287_vm7, %v805_v55  ;;  %741 = vmatpush.msk.msrb.mxu1 %vm287_vm7, %v805_v55 }
  0x8e   :  { %v1137_v40 = vpop.permute.xlu0 %250  ;;  %vm285_vm11 = vcmp.eq.s32.totalorder %v1125_v35, %v932_v50  ;;  %398 = vmatpush.msra.mxu3 %v397_v36  ;;  %493 = vmatpush.msrb.mxu0 %v1088_v24  ;;  %v409_v47 = vand.u32 4294901760, %v408_v37  ;;  %v415_v2 = vand.u32 4294901760, %v414_v43  ;;  %v455_v58 = vand.u32 4294901760, %v1226_v30 }
  0x8f   :  { %vm286_vm12 = vcmp.eq.s32.totalorder %v1137_v40, %v932_v50  ;;  %v706_v44 = vsel %vm285_vm11, 1.0, %v804_v53 }
  0x90   :  { %726 = vmatpush.msk.msra.mxu2 %vm286_vm12, %v805_v55  ;;  %742 = vmatpush.msk.msrb.mxu1 %vm286_vm12, %v805_v55  ;;  %v707_v45 = vsel %vm286_vm12, 1.0, %v804_v53  ;;  %v1169_v46 = vsub.f32 %v706_v44, %v706_v44 }
  0x91   :  { %404 = vmatpush.msra.mxu3 %v403_v42  ;;  %496 = vmatpush.msrb.mxu0 %v1096_v28  ;;  %v1174_v54 = vsub.f32 %v707_v45, %v707_v45  ;;  %v439_v45 = vand.u32 4294901760, %v438_v25 }
  0x92   :  { %v94_v61 = vpop.f32.mrf.mxu1  ;;  %727 = vmatpush.msk.msra.mxu2 %vm285_vm11, %v805_v55  ;;  %743 = vmatpush.msk.msrb.mxu1 %vm285_vm11, %v805_v55  ;;  %v431_v0 = vand.u32 4294901760, %v1169_v46 }
  0x93   :  { %410 = vmatpush.msra.mxu3 %v409_v47  ;;  %499 = vmatpush.msrb.mxu0 %v1174_v54  ;;  %v425_v3 = vand.u32 4294901760, %v1174_v54  ;;  %v95_v14 = vadd.f32 %v94_v61, %v53_v34 }
  0x94   :  { %728 = vmatpush.msk.msra.mxu2 %vm284_vm10, %v805_v55  ;;  %744 = vmatpush.msk.msrb.mxu1 %vm284_vm10, %v805_v55  ;;  %v432_v22 = vsub.f32 %v1169_v46, %v431_v0 }
  0x95   :  { %v124_v15 = vpop.f32.mrf.mxu0  ;;  %416 = vmatpush.msra.mxu3 %v415_v2  ;;  %502 = vmatpush.msrb.mxu0 %v1169_v46  ;;  %v1204_v19 = vpop.permute.xlu1 %238  ;;  %v426_v21 = vsub.f32 %v1174_v54, %v425_v3 }
  0x96   :  { %v1212_v23 = vpop.permute.xlu0 %241  ;;  %vm282_vm14 = vcmp.eq.s32.totalorder %v1204_v19, %v932_v50  ;;  %v125_v36 = vadd.f32 %v124_v15, %v95_v14  ;;  %v433_v37 = vand.u32 4294901760, %v432_v22 }
  0x97   :  { %vm283_vm15 = vcmp.eq.s32.totalorder %v1212_v23, %v932_v50  ;;  %422 = vmatpush.msra.mxu3 %v421_v20  ;;  %505 = vmatpush.msrb.mxu0 %v1145_v41  ;;  %v427_v27 = vand.u32 4294901760, %v426_v21  ;;  %v703_v29 = vsel %vm282_vm14, 1.0, %v804_v53  ;;  %v456_v21 = vsub.f32 %v1226_v30, %v455_v58 }
  0x98   :  { %729 = vmatpush.msk.msra.mxu2 %vm283_vm15, %v805_v55  ;;  %745 = vmatpush.msk.msrb.mxu1 %vm283_vm15, %v805_v55  ;;  %v704_v33 = vsel %vm283_vm15, 1.0, %v804_v53  ;;  %v1240_v34 = vsub.f32 %v703_v29, %v703_v29 }
  0x99   :  { %428 = vmatpush.msra.mxu3 %v427_v27  ;;  %v1242_v42 = vsub.f32 %v704_v33, %v704_v33 }
  0x9a   :  { %v151_v43 = vpop.f32.mrf.mxu1  ;;  %730 = vmatpush.msk.msra.mxu2 %vm282_vm14, %v805_v55  ;;  %746 = vmatpush.msk.msrb.mxu1 %vm282_vm14, %v805_v55  ;;  %v449_v44 = vand.u32 4294901760, %v1240_v34 }
  0x9b   :  { %434 = vmatpush.msra.mxu3 %v433_v37  ;;  %508 = vmatpush.msrb.mxu0 %v1242_v42  ;;  %v443_v47 = vand.u32 4294901760, %v1242_v42  ;;  %v152_v61 = vadd.f32 %v151_v43, %v125_v36  ;;  %v457_v37 = vand.u32 4294901760, %v456_v21 }
  0x9c   :  { %731 = vmatpush.msk.msra.mxu2 %vm281_vm13, %v805_v55  ;;  %747 = vmatpush.msk.msrb.mxu1 %vm281_vm13, %v805_v55  ;;  %v450_v4 = vsub.f32 %v1240_v34, %v449_v44 }
  0x9d   :  { %440 = vmatpush.msra.mxu3 %v439_v45  ;;  %511 = vmatpush.msrb.mxu0 %v1240_v34  ;;  %v444_v2 = vsub.f32 %v1242_v42, %v443_v47  ;;  %v184_v14 = vpop.f32.mrf.mxu0 }
  0x9e   :  { %v1271_v15 = vpop.permute.xlu0 %232  ;;  %v185_v25 = vadd.f32 %v184_v14, %v152_v61  ;;  %v451_v27 = vand.u32 4294901760, %v450_v4 }
  0x9f   :  { %vm280_vm0 = vcmp.eq.s32.totalorder %v1271_v15, %v932_v50  ;;  %514 = vmatpush.msrb.mxu0 %v1226_v30  ;;  %v445_v20 = vand.u32 4294901760, %v444_v2 }
  0xa0   :  { %732 = vmatpush.msk.msra.mxu2 %vm280_vm0, %v805_v55  ;;  %748 = vmatpush.msk.msrb.mxu1 %vm280_vm0, %v805_v55  ;;  %v701_v22 = vsel %vm280_vm0, 1.0, %v804_v53 }
  0xa1   :  { %446 = vmatpush.msra.mxu3 %v445_v20  ;;  %v460_v29 = vsub.f32 %v701_v22, %v701_v22 }
  0xa2   :  { %566 = vmatpush.msrb.mxu2 %v371_v59  ;;  %v209_v33 = vpop.f32.mrf.mxu1 }
  0xa3   :  { %v210_v36 = vadd.f32 %v209_v33, %v185_v25  ;;  %452 = vmatpush.msra.mxu3 %v451_v27  ;;  %517 = vmatpush.msrb.mxu0 %v460_v29  ;;  %v461_v43 = vand.u32 4294901760, %v460_v29 }
  0xa4   :  { %570 = vmatpush.msrb.mxu2 %v377_v10 }
  0xa5   :  { %v212_v45 = vmul.f32 1.442695, %v210_v36  ;;  %458 = vmatpush.msra.mxu3 %v457_v37  ;;  %v462_v2 = vsub.f32 %v460_v29, %v461_v43 }
  0xa6   :  { %574 = vmatpush.msrb.mxu2 %v383_v8 }
  0xa7   :  { %773 = vpow2.f32 %v212_v45  ;;  %v463_v53 = vand.u32 4294901760, %v462_v2 }
  0xa8   :  { %578 = vmatpush.msrb.mxu2 %v389_v11 }
  0xa9   :  { %464 = vmatpush.msra.mxu3 %v463_v53 }
  0xaa   :  { %582 = vmatpush.msrb.mxu2 %v395_v16 }
  0xab   :  { %749 = vmatpush.msk.msrb.mxu3 %vm295_vm1, %v805_v55 }
  0xac   :  { %586 = vmatpush.msrb.mxu2 %v401_v18 }
  0xad   :  { %750 = vmatpush.msk.msrb.mxu3 %vm294_vm6, %v805_v55  ;;  %v1311_v56 = vpop.eup %773 }
  0xae   :  { %590 = vmatpush.msrb.mxu2 %v407_v31  ;;  %v360_v52 = vand.u32 4294901760, %v1311_v56 }
  0xaf   :  { %751 = vmatpush.msk.msrb.mxu3 %vm293_vm2, %v805_v55 }
  0xb0   :  { %466 = vmatmul.f32.vlgmr.msra.gmra.mxu3 %v360_v52  ;;  %594 = vmatpush.msrb.mxu2 %v413_v32  ;;  %v361_v59 = vsub.f32 %v1311_v56, %v360_v52 }
  0xb1   :  { %752 = vmatpush.msk.msrb.mxu3 %vm292_vm5, %v805_v55 }
  0xb2   :  { %520 = vmatmul.f32.vlgmr.msrb.gmra.mxu0 %v361_v59  ;;  %598 = vmatpush.msrb.mxu2 %v419_v38  ;;  %v362_v62 = vand.u32 4294901760, %v361_v59 }
  0xb3   :  { %753 = vmatpush.msk.msrb.mxu3 %vm291_vm3, %v805_v55 }
  0xb4   :  { %559 = vmatmul.f32.vlgmr.msrb.gmra.mxu1 %v362_v62  ;;  %602 = vmatpush.msrb.mxu2 %v425_v3  ;;  %v363_v51 = vsub.f32 %v361_v59, %v362_v62 }
  0xb5   :  { %754 = vmatpush.msk.msrb.mxu3 %vm290_vm4, %v805_v55 }
  0xb6   :  { %606 = vmatpush.msrb.mxu2 %v431_v0  ;;  %v364_v60 = vand.u32 4294901760, %v363_v51 }
  0xb7   :  { %755 = vmatpush.msk.msrb.mxu3 %vm289_vm9, %v805_v55 }
  0xb8   :  { %365 = vmatmul.f32.vlgmr.msra.gmra.mxu2 %v364_v60 }
  0xb9   :  { %610 = vmatpush.msrb.mxu2 %v437_v1  ;;  %756 = vmatpush.msk.msrb.mxu3 %vm288_vm8, %v805_v55 }
  0xbb   :  { %614 = vmatpush.msrb.mxu2 %v443_v47  ;;  %757 = vmatpush.msk.msrb.mxu3 %vm287_vm7, %v805_v55 }
  0xbd   :  { %618 = vmatpush.msrb.mxu2 %v449_v44  ;;  %758 = vmatpush.msk.msrb.mxu3 %vm286_vm12, %v805_v55 }
  0xbf   :  { %622 = vmatpush.msrb.mxu2 %v455_v58  ;;  %759 = vmatpush.msk.msrb.mxu3 %vm285_vm11, %v805_v55 }
  0xc1   :  { %626 = vmatpush.msrb.mxu2 %v461_v43  ;;  %760 = vmatpush.msk.msrb.mxu3 %vm284_vm10, %v805_v55 }
  0xc2   :  { %628 = vmatmul.f32.vlgmr.msrb.gmra.mxu2 %v360_v52 }
  0xc3   :  { %761 = vmatpush.msk.msrb.mxu3 %vm283_vm15, %v805_v55 }
  0xc5   :  { %762 = vmatpush.msk.msrb.mxu3 %vm282_vm14, %v805_v55 }
  0xc7   :  { %763 = vmatpush.msk.msrb.mxu3 %vm281_vm13, %v805_v55 }
  0xc9   :  { %764 = vmatpush.msk.msrb.mxu3 %vm280_vm0, %v805_v55 }
  0xca   :  { %665 = vmatmul.f32.vlgmr.msrb.gmra.mxu3 %v360_v52 }
 0x12f   :  { %v521_v63 = vpop.f32.mrf.mxu0 }
 0x131   :  { %v560_v6 = vpop.f32.mrf.mxu1 }
 0x133   :  { %v467_v49 = vpop.f32.mrf.mxu3 }
 0x13b   :  { %v366_v48 = vpop.f32.mrf.mxu2 }
 0x13c   :  { %v468_v57 = vadd.f32 %v467_v49, %v366_v48 }
 0x13e   :  { %v522_v5 = vadd.f32 %v521_v63, %v468_v57 }
 0x140   :  { %v561_v8 = vadd.f32 %v560_v6, %v522_v5 }
 0x145   :  { %v629_v7 = vpop.f32.mrf.mxu2 }
 0x146   :  { %v630_v9 = vadd.f32 %v629_v7, %v561_v8 }
 0x14d   :  { %v666_v10 = vpop.f32.mrf.mxu3 }
 0x14e   :  { %v667_v11 = vadd.f32 %v666_v10, %v630_v9 }
 0x150   :  { %775 = vrcp.f32 %v667_v11  ;;  %v680_v17 = vand.u32 2147483648, %v667_v11  ;;  %v678_v50 = vand.u32 2147483647, %v667_v11  ;;  %vm674_vm2 = vweird.f32 %v667_v11 }
 0x152   :  { %v681_v24 = vor.u32 1.1754944e-38, %v680_v17  ;;  %vm679_vm4 = vcmp.eq.f32.partialorder %v678_v50, 8.507059e+37 }
 0x156   :  { %v776_v12 = vpop.eup %775 }
 0x157   :  { %v670_v13 = vmul.f32 %v776_v12, %v667_v11  ;;  %vm675_vm1 = vweird.f32 %v776_v12 }
 0x158   :  { %vm676_vm3 = vmor %vm674_vm2, %vm675_vm1 }
 0x159   :  { %v671_v16 = vsub.f32 1.0, %v670_v13 }
 0x15b   :  { %v672_v18 = vmul.f32 %v776_v12, %v671_v16 }
 0x15d   :  { %v673_v55 = vadd.f32 %v776_v12, %v672_v18 }
 0x15f   :  { %v677_v26 = vsel %vm676_vm3, %v776_v12, %v673_v55 }
 0x160   :  { %v682_v28 = vsel %vm679_vm4, %v681_v24, %v677_v26 }
 0x161   :  { %v683_v31 = vmul.f32 %v1311_v56, %v682_v28 }
 0x163   :  { %684 = vst [vmem:[#allocation2] sm:$0x1] %v683_v31 }
 0x164   :  { %695 = dma.vmem_to_hbm [thread:$0]  %s691_s3, 16, %s693_s5, [#allocation3]  }
 0x165   :  { %801 = dma.done.wait [#allocation3], 16  }
 0x166   :  { %802 = vsyncadd [#allocation3], 4294967280 }
 0x167   :  { %700 = vsyncpa [#allocation3], 1 }

</bundles_post_ra>
